<compile_context>
chip_gen: v7x
topology: tpu7x:2x2x1
jax: 0.10.0
libtpu: 0.0.40
codegen_flags: <defaults>
</compile_context>

<pallas_src>
import functools

import jax
import jax.numpy as jnp
from jax import lax
from jax.experimental import pallas as pl
from jax.experimental.pallas import tpu as pltpu

LANES = 128
NUM_CLASSES = 3
# penalty_matrix[true_class, pred_class] from the module (a fixed constant).
PENALTY_MATRIX = ((0.0, 1.0, 2.0),
                  (5.0, 0.0, 1.0),
                  (20.0, 10.0, 0.0))


def _round_up(x, m):
    return ((x + m - 1) // m) * m


def clinical_safety_loss_kernel(x_ref, t_ref, out_ref,
                                acc_wce, acc_w, acc_pen, acc_crit, acc_miss,
                                *, batch_size, tb, class_weights, critical_miss_penalty):
    i = pl.program_id(0)

    @pl.when(i == 0)
    def _init():
        acc_wce[...] = jnp.zeros_like(acc_wce)
        acc_w[...] = jnp.zeros_like(acc_w)
        acc_pen[...] = jnp.zeros_like(acc_pen)
        acc_crit[...] = jnp.zeros_like(acc_crit)
        acc_miss[...] = jnp.zeros_like(acc_miss)

    # Class-major, lane-dense tiles: one (1, tb) vreg row per class.
    x0 = x_ref[0:1, :]                                   # (1, tb) f32
    x1 = x_ref[1:2, :]
    x2 = x_ref[2:3, :]
    t = t_ref[...]                                       # (1, tb) int32

    # ---- cross entropy: lse(x) - x[target], unrolled over the 3 classes -------
    m = jnp.maximum(x0, jnp.maximum(x1, x2))
    denom = jnp.exp(x0 - m) + jnp.exp(x1 - m) + jnp.exp(x2 - m)
    lse = jnp.log(denom) + m
    logit_t = jnp.where(t == 0, x0, jnp.where(t == 1, x1, x2))
    ce = lse - logit_t                                   # (1, tb)

    # ---- argmax over classes (first maximal index, like torch.argmax) ---------
    p = jnp.where(x0 >= m, 0, jnp.where(x1 >= m, 1, 2)).astype(jnp.int32)

    # ---- safety penalty: penalty_matrix[true, pred] via a small select chain ---
    pen_r0 = jnp.where(p == 1, 1.0, jnp.where(p == 2, 2.0, 0.0))
    pen_r1 = jnp.where(p == 0, 5.0, jnp.where(p == 2, 1.0, 0.0))
    pen_r2 = jnp.where(p == 0, 20.0, jnp.where(p == 1, 10.0, 0.0))
    pen = jnp.where(t == 0, pen_r0, jnp.where(t == 1, pen_r1, pen_r2))

    # ---- critical-miss bookkeeping ---------------------------------------------
    is_crit = (t == NUM_CLASSES - 1).astype(jnp.float32)                  # target == 2
    is_miss = is_crit * (p != NUM_CLASSES - 1).astype(jnp.float32)        # pred != 2

    # ---- valid-lane mask for batch padding --------------------------------------
    col = i * tb + lax.broadcasted_iota(jnp.int32, (1, tb), 1)
    valid = (col < batch_size).astype(jnp.float32)

    if class_weights is None:
        wce = ce
        w_term = valid
    else:
        w0, w1, w2 = class_weights
        w = jnp.where(t == 0, w0, jnp.where(t == 1, w1, w2))
        wce = w * ce
        w_term = valid * w

    # ---- per-statistic accumulators: plain VPU adds, no reductions per tile -----
    acc_wce[...] += valid * wce
    acc_w[...] += w_term
    acc_pen[...] += valid * pen
    acc_crit[...] += valid * is_crit
    acc_miss[...] += valid * is_miss

    @pl.when(i == pl.num_programs(0) - 1)
    def _finalize():
        sum_wce = jnp.sum(acc_wce[...], keepdims=True)   # (1, 1)
        sum_w = jnp.sum(acc_w[...], keepdims=True)
        sum_pen = jnp.sum(acc_pen[...], keepdims=True)
        n_crit = jnp.sum(acc_crit[...], keepdims=True)
        n_miss = jnp.sum(acc_miss[...], keepdims=True)

        ce_mean = sum_wce / sum_w                        # weighted-CE mean
        safety = sum_pen / float(batch_size)             # mean penalty
        crit_pen = jnp.where(n_crit > 0.0,
                             n_miss / jnp.maximum(n_crit, 1.0) * critical_miss_penalty,
                             0.0)
        total = ce_mean + 0.3 * safety + 0.5 * crit_pen  # (1, 1)
        out_ref[...] = jnp.broadcast_to(total, out_ref.shape)   # lane-dense store


def clinical_safety_loss(outputs, targets, class_weights=None,
                         under_triage_penalty=10.0, critical_miss_penalty=20.0,
                         tb=8192):
    """Pallas equivalent of ClinicalSafetyLoss()(outputs, targets) -> scalar f32.

    under_triage_penalty is accepted for signature parity but (as in the PyTorch
    forward) is unused: the penalty matrix is a fixed constant.  class_weights,
    if given, must be 3 host-side constants (as in the module constructor).
    """
    del under_triage_penalty
    outputs = jnp.asarray(outputs, jnp.float32)
    targets = jnp.asarray(targets, jnp.int32)
    B, C = outputs.shape
    assert C == NUM_CLASSES

    # Batch tile on the lane axis: multiple of 128, no bigger than the padded batch.
    tb = _round_up(min(max(tb, LANES), _round_up(B, LANES)), LANES)
    Bp = _round_up(B, tb)
    grid = (Bp // tb,)

    # Class-major, lane-dense layout: (3, Bp) logits, (1, Bp) targets.
    # Padding value 0.0 stays finite through exp; padded lanes are masked in-kernel.
    xt = jnp.pad(outputs.T, ((0, 0), (0, Bp - B)))
    tt = jnp.pad(targets.reshape(1, B), ((0, 0), (0, Bp - B)))

    cw = None if class_weights is None else tuple(float(w) for w in class_weights)

    kernel = functools.partial(
        clinical_safety_loss_kernel,
        batch_size=B, tb=tb, class_weights=cw,
        critical_miss_penalty=float(critical_miss_penalty))

    out = pl.pallas_call(
        kernel,
        grid=grid,
        in_specs=[pl.BlockSpec((NUM_CLASSES, tb), lambda i: (0, i)),   # logits tile
                  pl.BlockSpec((1, tb), lambda i: (0, i))],            # targets tile
        out_specs=pl.BlockSpec((1, LANES), lambda i: (0, 0)),
        out_shape=jax.ShapeDtypeStruct((1, LANES), jnp.float32),
        scratch_shapes=[pltpu.VMEM((1, tb), jnp.float32)] * 5,
        compiler_params=pltpu.CompilerParams(dimension_semantics=("arbitrary",)),
    )(xt, tt)
    return out[0, 0]


def _reference_loss(outputs, targets, class_weights=None, critical_miss_penalty=20.0):
    """Pure-JAX reference mirroring the PyTorch forward exactly."""
    outputs = jnp.asarray(outputs, jnp.float32)
    targets = jnp.asarray(targets, jnp.int32)
    B, C = outputs.shape
    logp = jax.nn.log_softmax(outputs, axis=-1)
    onehot = jax.nn.one_hot(targets, C, dtype=jnp.float32)
    per = -jnp.sum(onehot * logp, axis=-1)
    w = jnp.ones((C,), jnp.float32) if class_weights is None else jnp.asarray(class_weights, jnp.float32)
    ws = w[targets]
    ce = jnp.sum(ws * per) / jnp.sum(ws)
    preds = jnp.argmax(outputs, axis=-1)
    P = jnp.array(PENALTY_MATRIX, jnp.float32)
    safety = jnp.mean(P[targets, preds])
    crit = targets == 2
    n_crit = jnp.sum(crit)
    miss = jnp.sum(crit & (preds != 2))
    crit_pen = jnp.where(n_crit > 0,
                         miss / jnp.maximum(n_crit, 1) * critical_miss_penalty, 0.0)
    return (ce + 0.3 * safety + 0.5 * crit_pen).astype(jnp.float32)


if __name__ == "__main__":
    key = jax.random.PRNGKey(0)
    k1, k2, k3, k4 = jax.random.split(key, 4)

    # Small example consistent with the module: (batch, 3-class logits) + int targets.
    B, C = 16, 3
    logits = jax.random.normal(k1, (B, C), jnp.float32)
    targets = jax.random.randint(k2, (B,), 0, C, dtype=jnp.int32)

    loss = jax.block_until_ready(clinical_safety_loss(logits, targets))
    ref = _reference_loss(logits, targets)
    assert loss.shape == () and loss.dtype == jnp.float32
    assert jnp.allclose(loss, ref, rtol=1e-4, atol=1e-5), (loss, ref)

    # Larger, non-multiple batch (multi-tile accumulation + lane masking) with
    # class weights to exercise the weighted-CE path.
    B2 = 300
    logits2 = jax.random.normal(k3, (B2, C), jnp.float32)
    targets2 = jax.random.randint(k4, (B2,), 0, C, dtype=jnp.int32)
    loss2 = jax.block_until_ready(
        clinical_safety_loss(logits2, targets2, class_weights=[1.0, 2.0, 4.0], tb=128))
    ref2 = _reference_loss(logits2, targets2, class_weights=jnp.array([1.0, 2.0, 4.0]))
    assert jnp.allclose(loss2, ref2, rtol=1e-4, atol=1e-5), (loss2, ref2)

    print("KERNEL_OK")
</pallas_src>

<mosaic_0001>
module attributes {stable_mosaic.version = 11 : i64} {
  func.func @clinical_safety_loss_kernel(%arg0: i32, %arg1: memref<3x128xf32, #tpu.memory_space<vmem>>, %arg2: memref<1x128xi32, #tpu.memory_space<vmem>>, %arg3: memref<1x128xf32, #tpu.memory_space<vmem>>, %arg4: memref<1x128xf32, #tpu.memory_space<vmem>>, %arg5: memref<1x128xf32, #tpu.memory_space<vmem>>, %arg6: memref<1x128xf32, #tpu.memory_space<vmem>>, %arg7: memref<1x128xf32, #tpu.memory_space<vmem>>, %arg8: memref<1x128xf32, #tpu.memory_space<vmem>>) attributes {dimension_semantics = [#tpu.dimension_semantics<arbitrary>], iteration_bounds = array<i64: 1>, scalar_prefetch = 0 : i64, scratch_operands = 5 : i64, tpu.core_type = #tpu.core_type<tc>, window_params = [{transform_indices = @transform_0, window_bounds = array<i64: 3, 128>}, {transform_indices = @transform_1, window_bounds = array<i64: 1, 128>}, {pipeline_mode = #tpu.pipeline_mode<synchronous>, transform_indices = @transform_2, window_bounds = array<i64: 1, 128>}]} {
    %c0_i32 = arith.constant 0 : i32
    %0 = arith.cmpi eq, %arg0, %c0_i32 : i32
    %1 = arith.extui %0 : i1 to i32
    %c0_i32_0 = arith.constant 0 : i32
    %2 = arith.cmpi ne, %1, %c0_i32_0 : i32
    scf.if %2 {
      %cst_49 = arith.constant 0.000000e+00 : f32
      %105 = vector.broadcast %cst_49 : f32 to vector<1x128xf32>
      %c0_50 = arith.constant 0 : index
      %c0_51 = arith.constant 0 : index
      %106 = vector.load %arg4[%c0_50, %c0_51] : memref<1x128xf32, #tpu.memory_space<vmem>>, vector<1x128xf32>
      tpu.vector_store %arg4[%c0_50, %c0_51], %105 {strides = array<i32>} : memref<1x128xf32, #tpu.memory_space<vmem>>, vector<1x128xf32>,
      %cst_52 = arith.constant 0.000000e+00 : f32
      %107 = vector.broadcast %cst_52 : f32 to vector<1x128xf32>
      %c0_53 = arith.constant 0 : index
      %c0_54 = arith.constant 0 : index
      %108 = vector.load %arg5[%c0_53, %c0_54] : memref<1x128xf32, #tpu.memory_space<vmem>>, vector<1x128xf32>
      tpu.vector_store %arg5[%c0_53, %c0_54], %107 {strides = array<i32>} : memref<1x128xf32, #tpu.memory_space<vmem>>, vector<1x128xf32>,
      %cst_55 = arith.constant 0.000000e+00 : f32
      %109 = vector.broadcast %cst_55 : f32 to vector<1x128xf32>
      %c0_56 = arith.constant 0 : index
      %c0_57 = arith.constant 0 : index
      %110 = vector.load %arg6[%c0_56, %c0_57] : memref<1x128xf32, #tpu.memory_space<vmem>>, vector<1x128xf32>
      tpu.vector_store %arg6[%c0_56, %c0_57], %109 {strides = array<i32>} : memref<1x128xf32, #tpu.memory_space<vmem>>, vector<1x128xf32>,
      %cst_58 = arith.constant 0.000000e+00 : f32
      %111 = vector.broadcast %cst_58 : f32 to vector<1x128xf32>
      %c0_59 = arith.constant 0 : index
      %c0_60 = arith.constant 0 : index
      %112 = vector.load %arg7[%c0_59, %c0_60] : memref<1x128xf32, #tpu.memory_space<vmem>>, vector<1x128xf32>
      tpu.vector_store %arg7[%c0_59, %c0_60], %111 {strides = array<i32>} : memref<1x128xf32, #tpu.memory_space<vmem>>, vector<1x128xf32>,
      %cst_61 = arith.constant 0.000000e+00 : f32
      %113 = vector.broadcast %cst_61 : f32 to vector<1x128xf32>
      %c0_62 = arith.constant 0 : index
      %c0_63 = arith.constant 0 : index
      %114 = vector.load %arg8[%c0_62, %c0_63] : memref<1x128xf32, #tpu.memory_space<vmem>>, vector<1x128xf32>
      tpu.vector_store %arg8[%c0_62, %c0_63], %113 {strides = array<i32>} : memref<1x128xf32, #tpu.memory_space<vmem>>, vector<1x128xf32>,
    } else {
    }
    %c0 = arith.constant 0 : index
    %c0_1 = arith.constant 0 : index
    %3 = vector.load %arg1[%c0, %c0_1] : memref<3x128xf32, #tpu.memory_space<vmem>>, vector<1x128xf32>
    %c1 = arith.constant 1 : index
    %c0_2 = arith.constant 0 : index
    %4 = vector.load %arg1[%c1, %c0_2] : memref<3x128xf32, #tpu.memory_space<vmem>>, vector<1x128xf32>
    %c2 = arith.constant 2 : index
    %c0_3 = arith.constant 0 : index
    %5 = vector.load %arg1[%c2, %c0_3] : memref<3x128xf32, #tpu.memory_space<vmem>>, vector<1x128xf32>
    %c0_4 = arith.constant 0 : index
    %c0_5 = arith.constant 0 : index
    %6 = vector.load %arg2[%c0_4, %c0_5] : memref<1x128xi32, #tpu.memory_space<vmem>>, vector<1x128xi32>
    %7 = arith.maximumf %4, %5 : vector<1x128xf32>
    %8 = arith.maximumf %3, %7 : vector<1x128xf32>
    %9 = arith.subf %3, %8 : vector<1x128xf32>
    %10 = math.exp %9 : vector<1x128xf32>
    %11 = arith.subf %4, %8 : vector<1x128xf32>
    %12 = math.exp %11 : vector<1x128xf32>
    %13 = arith.addf %10, %12 : vector<1x128xf32>
    %14 = arith.subf %5, %8 : vector<1x128xf32>
    %15 = math.exp %14 : vector<1x128xf32>
    %16 = arith.addf %13, %15 : vector<1x128xf32>
    %17 = math.log %16 : vector<1x128xf32>
    %18 = arith.addf %17, %8 : vector<1x128xf32>
    %c0_i32_6 = arith.constant 0 : i32
    %19 = vector.broadcast %c0_i32_6 : i32 to vector<1x128xi32>
    %20 = arith.cmpi eq, %6, %19 : vector<1x128xi32>
    %c1_i32 = arith.constant 1 : i32
    %21 = vector.broadcast %c1_i32 : i32 to vector<1x128xi32>
    %22 = arith.cmpi eq, %6, %21 : vector<1x128xi32>
    %23 = arith.select %22, %4, %5 : vector<1x128xi1>, vector<1x128xf32>
    %24 = arith.select %20, %3, %23 : vector<1x128xi1>, vector<1x128xf32>
    %25 = arith.subf %18, %24 : vector<1x128xf32>
    %26 = arith.cmpf oge, %3, %8 : vector<1x128xf32>
    %27 = arith.cmpf oge, %4, %8 : vector<1x128xf32>
    %c1_i32_7 = arith.constant 1 : i32
    %c2_i32 = arith.constant 2 : i32
    %28 = vector.broadcast %c1_i32_7 : i32 to vector<1x128xi32>
    %29 = vector.broadcast %c2_i32 : i32 to vector<1x128xi32>
    %30 = arith.select %27, %28, %29 : vector<1x128xi1>, vector<1x128xi32>
    %c0_i32_8 = arith.constant 0 : i32
    %31 = vector.broadcast %c0_i32_8 : i32 to vector<1x128xi32>
    %32 = arith.select %26, %31, %30 : vector<1x128xi1>, vector<1x128xi32>
    %c1_i32_9 = arith.constant 1 : i32
    %33 = vector.broadcast %c1_i32_9 : i32 to vector<1x128xi32>
    %34 = arith.cmpi eq, %32, %33 : vector<1x128xi32>
    %c2_i32_10 = arith.constant 2 : i32
    %35 = vector.broadcast %c2_i32_10 : i32 to vector<1x128xi32>
    %36 = arith.cmpi eq, %32, %35 : vector<1x128xi32>
    %cst = arith.constant 2.000000e+00 : f32
    %cst_11 = arith.constant 0.000000e+00 : f32
    %37 = vector.broadcast %cst : f32 to vector<1x128xf32>
    %38 = vector.broadcast %cst_11 : f32 to vector<1x128xf32>
    %39 = arith.select %36, %37, %38 : vector<1x128xi1>, vector<1x128xf32>
    %cst_12 = arith.constant 1.000000e+00 : f32
    %40 = vector.broadcast %cst_12 : f32 to vector<1x128xf32>
    %41 = arith.select %34, %40, %39 : vector<1x128xi1>, vector<1x128xf32>
    %c0_i32_13 = arith.constant 0 : i32
    %42 = vector.broadcast %c0_i32_13 : i32 to vector<1x128xi32>
    %43 = arith.cmpi eq, %32, %42 : vector<1x128xi32>
    %c2_i32_14 = arith.constant 2 : i32
    %44 = vector.broadcast %c2_i32_14 : i32 to vector<1x128xi32>
    %45 = arith.cmpi eq, %32, %44 : vector<1x128xi32>
    %cst_15 = arith.constant 1.000000e+00 : f32
    %cst_16 = arith.constant 0.000000e+00 : f32
    %46 = vector.broadcast %cst_15 : f32 to vector<1x128xf32>
    %47 = vector.broadcast %cst_16 : f32 to vector<1x128xf32>
    %48 = arith.select %45, %46, %47 : vector<1x128xi1>, vector<1x128xf32>
    %cst_17 = arith.constant 5.000000e+00 : f32
    %49 = vector.broadcast %cst_17 : f32 to vector<1x128xf32>
    %50 = arith.select %43, %49, %48 : vector<1x128xi1>, vector<1x128xf32>
    %c0_i32_18 = arith.constant 0 : i32
    %51 = vector.broadcast %c0_i32_18 : i32 to vector<1x128xi32>
    %52 = arith.cmpi eq, %32, %51 : vector<1x128xi32>
    %c1_i32_19 = arith.constant 1 : i32
    %53 = vector.broadcast %c1_i32_19 : i32 to vector<1x128xi32>
    %54 = arith.cmpi eq, %32, %53 : vector<1x128xi32>
    %cst_20 = arith.constant 1.000000e+01 : f32
    %cst_21 = arith.constant 0.000000e+00 : f32
    %55 = vector.broadcast %cst_20 : f32 to vector<1x128xf32>
    %56 = vector.broadcast %cst_21 : f32 to vector<1x128xf32>
    %57 = arith.select %54, %55, %56 : vector<1x128xi1>, vector<1x128xf32>
    %cst_22 = arith.constant 2.000000e+01 : f32
    %58 = vector.broadcast %cst_22 : f32 to vector<1x128xf32>
    %59 = arith.select %52, %58, %57 : vector<1x128xi1>, vector<1x128xf32>
    %c0_i32_23 = arith.constant 0 : i32
    %60 = vector.broadcast %c0_i32_23 : i32 to vector<1x128xi32>
    %61 = arith.cmpi eq, %6, %60 : vector<1x128xi32>
    %c1_i32_24 = arith.constant 1 : i32
    %62 = vector.broadcast %c1_i32_24 : i32 to vector<1x128xi32>
    %63 = arith.cmpi eq, %6, %62 : vector<1x128xi32>
    %64 = arith.select %63, %50, %59 : vector<1x128xi1>, vector<1x128xf32>
    %65 = arith.select %61, %41, %64 : vector<1x128xi1>, vector<1x128xf32>
    %c2_i32_25 = arith.constant 2 : i32
    %66 = vector.broadcast %c2_i32_25 : i32 to vector<1x128xi32>
    %67 = arith.cmpi eq, %6, %66 : vector<1x128xi32>
    %68 = arith.extui %67 : vector<1x128xi1> to vector<1x128xi32>
    %69 = arith.sitofp %68 : vector<1x128xi32> to vector<1x128xf32>
    %c2_i32_26 = arith.constant 2 : i32
    %70 = vector.broadcast %c2_i32_26 : i32 to vector<1x128xi32>
    %71 = arith.cmpi ne, %32, %70 : vector<1x128xi32>
    %72 = arith.extui %71 : vector<1x128xi1> to vector<1x128xi32>
    %73 = arith.sitofp %72 : vector<1x128xi32> to vector<1x128xf32>
    %74 = arith.mulf %69, %73 : vector<1x128xf32>
    %c128_i32 = arith.constant 128 : i32
    %75 = arith.muli %arg0, %c128_i32 : i32
    %76 = tpu.iota {dimensions = array<i32: 1>} : vector<1x128xi32>
    %77 = vector.broadcast %75 : i32 to vector<1x128xi32>
    %78 = arith.addi %77, %76 : vector<1x128xi32>
    %c16_i32 = arith.constant 16 : i32
    %79 = vector.broadcast %c16_i32 : i32 to vector<1x128xi32>
    %80 = arith.cmpi slt, %78, %79 : vector<1x128xi32>
    %81 = arith.extui %80 : vector<1x128xi1> to vector<1x128xi32>
    %82 = arith.sitofp %81 : vector<1x128xi32> to vector<1x128xf32>
    %c0_27 = arith.constant 0 : index
    %c0_28 = arith.constant 0 : index
    %83 = vector.load %arg4[%c0_27, %c0_28] : memref<1x128xf32, #tpu.memory_space<vmem>>, vector<1x128xf32>
    %84 = arith.mulf %82, %25 : vector<1x128xf32>
    %85 = arith.addf %83, %84 : vector<1x128xf32>
    %c0_29 = arith.constant 0 : index
    %c0_30 = arith.constant 0 : index
    %86 = vector.load %arg4[%c0_29, %c0_30] : memref<1x128xf32, #tpu.memory_space<vmem>>, vector<1x128xf32>
    tpu.vector_store %arg4[%c0_29, %c0_30], %85 {strides = array<i32>} : memref<1x128xf32, #tpu.memory_space<vmem>>, vector<1x128xf32>,
    %c0_31 = arith.constant 0 : index
    %c0_32 = arith.constant 0 : index
    %87 = vector.load %arg5[%c0_31, %c0_32] : memref<1x128xf32, #tpu.memory_space<vmem>>, vector<1x128xf32>
    %88 = arith.addf %87, %82 : vector<1x128xf32>
    %c0_33 = arith.constant 0 : index
    %c0_34 = arith.constant 0 : index
    %89 = vector.load %arg5[%c0_33, %c0_34] : memref<1x128xf32, #tpu.memory_space<vmem>>, vector<1x128xf32>
    tpu.vector_store %arg5[%c0_33, %c0_34], %88 {strides = array<i32>} : memref<1x128xf32, #tpu.memory_space<vmem>>, vector<1x128xf32>,
    %c0_35 = arith.constant 0 : index
    %c0_36 = arith.constant 0 : index
    %90 = vector.load %arg6[%c0_35, %c0_36] : memref<1x128xf32, #tpu.memory_space<vmem>>, vector<1x128xf32>
    %91 = arith.mulf %82, %65 : vector<1x128xf32>
    %92 = arith.addf %90, %91 : vector<1x128xf32>
    %c0_37 = arith.constant 0 : index
    %c0_38 = arith.constant 0 : index
    %93 = vector.load %arg6[%c0_37, %c0_38] : memref<1x128xf32, #tpu.memory_space<vmem>>, vector<1x128xf32>
    tpu.vector_store %arg6[%c0_37, %c0_38], %92 {strides = array<i32>} : memref<1x128xf32, #tpu.memory_space<vmem>>, vector<1x128xf32>,
    %c0_39 = arith.constant 0 : index
    %c0_40 = arith.constant 0 : index
    %94 = vector.load %arg7[%c0_39, %c0_40] : memref<1x128xf32, #tpu.memory_space<vmem>>, vector<1x128xf32>
    %95 = arith.mulf %82, %69 : vector<1x128xf32>
    %96 = arith.addf %94, %95 : vector<1x128xf32>
    %c0_41 = arith.constant 0 : index
    %c0_42 = arith.constant 0 : index
    %97 = vector.load %arg7[%c0_41, %c0_42] : memref<1x128xf32, #tpu.memory_space<vmem>>, vector<1x128xf32>
    tpu.vector_store %arg7[%c0_41, %c0_42], %96 {strides = array<i32>} : memref<1x128xf32, #tpu.memory_space<vmem>>, vector<1x128xf32>,
    %c0_43 = arith.constant 0 : index
    %c0_44 = arith.constant 0 : index
    %98 = vector.load %arg8[%c0_43, %c0_44] : memref<1x128xf32, #tpu.memory_space<vmem>>, vector<1x128xf32>
    %99 = arith.mulf %82, %74 : vector<1x128xf32>
    %100 = arith.addf %98, %99 : vector<1x128xf32>
    %c0_45 = arith.constant 0 : index
    %c0_46 = arith.constant 0 : index
    %101 = vector.load %arg8[%c0_45, %c0_46] : memref<1x128xf32, #tpu.memory_space<vmem>>, vector<1x128xf32>
    tpu.vector_store %arg8[%c0_45, %c0_46], %100 {strides = array<i32>} : memref<1x128xf32, #tpu.memory_space<vmem>>, vector<1x128xf32>,
    %c0_i32_47 = arith.constant 0 : i32
    %102 = arith.cmpi eq, %arg0, %c0_i32_47 : i32
    %103 = arith.extui %102 : i1 to i32
    %c0_i32_48 = arith.constant 0 : i32
    %104 = arith.cmpi ne, %103, %c0_i32_48 : i32
    scf.if %104 {
      %c0_49 = arith.constant 0 : index
      %c0_50 = arith.constant 0 : index
      %105 = vector.load %arg4[%c0_49, %c0_50] : memref<1x128xf32, #tpu.memory_space<vmem>>, vector<1x128xf32>
      %106 = vector.shape_cast %105 : vector<1x128xf32> to vector<1x1x128xf32>
      %cst_51 = arith.constant dense<0.000000e+00> : vector<1xf32>
      %107 = vector.multi_reduction <add>, %106, %cst_51 [1, 2] : vector<1x1x128xf32> to vector<1xf32>
      %108 = vector.shape_cast %107 : vector<1xf32> to vector<1x1x1xf32>
      %109 = vector.extract %108[0, 0, 0] : f32 from vector<1x1x1xf32>
      %110 = vector.broadcast %109 : f32 to vector<1x1xf32>
      %c0_52 = arith.constant 0 : index
      %c0_53 = arith.constant 0 : index
      %111 = vector.load %arg5[%c0_52, %c0_53] : memref<1x128xf32, #tpu.memory_space<vmem>>, vector<1x128xf32>
      %112 = vector.shape_cast %111 : vector<1x128xf32> to vector<1x1x128xf32>
      %cst_54 = arith.constant dense<0.000000e+00> : vector<1xf32>
      %113 = vector.multi_reduction <add>, %112, %cst_54 [1, 2] : vector<1x1x128xf32> to vector<1xf32>
      %114 = vector.shape_cast %113 : vector<1xf32> to vector<1x1x1xf32>
      %115 = vector.extract %114[0, 0, 0] : f32 from vector<1x1x1xf32>
      %116 = vector.broadcast %115 : f32 to vector<1x1xf32>
      %c0_55 = arith.constant 0 : index
      %c0_56 = arith.constant 0 : index
      %117 = vector.load %arg6[%c0_55, %c0_56] : memref<1x128xf32, #tpu.memory_space<vmem>>, vector<1x128xf32>
      %118 = vector.shape_cast %117 : vector<1x128xf32> to vector<1x1x128xf32>
      %cst_57 = arith.constant dense<0.000000e+00> : vector<1xf32>
      %119 = vector.multi_reduction <add>, %118, %cst_57 [1, 2] : vector<1x1x128xf32> to vector<1xf32>
      %120 = vector.shape_cast %119 : vector<1xf32> to vector<1x1x1xf32>
      %121 = vector.extract %120[0, 0, 0] : f32 from vector<1x1x1xf32>
      %122 = vector.broadcast %121 : f32 to vector<1x1xf32>
      %c0_58 = arith.constant 0 : index
      %c0_59 = arith.constant 0 : index
      %123 = vector.load %arg7[%c0_58, %c0_59] : memref<1x128xf32, #tpu.memory_space<vmem>>, vector<1x128xf32>
      %124 = vector.shape_cast %123 : vector<1x128xf32> to vector<1x1x128xf32>
      %cst_60 = arith.constant dense<0.000000e+00> : vector<1xf32>
      %125 = vector.multi_reduction <add>, %124, %cst_60 [1, 2] : vector<1x1x128xf32> to vector<1xf32>
      %126 = vector.shape_cast %125 : vector<1xf32> to vector<1x1x1xf32>
      %127 = vector.extract %126[0, 0, 0] : f32 from vector<1x1x1xf32>
      %128 = vector.broadcast %127 : f32 to vector<1x1xf32>
      %c0_61 = arith.constant 0 : index
      %c0_62 = arith.constant 0 : index
      %129 = vector.load %arg8[%c0_61, %c0_62] : memref<1x128xf32, #tpu.memory_space<vmem>>, vector<1x128xf32>
      %130 = vector.shape_cast %129 : vector<1x128xf32> to vector<1x1x128xf32>
      %cst_63 = arith.constant dense<0.000000e+00> : vector<1xf32>
      %131 = vector.multi_reduction <add>, %130, %cst_63 [1, 2] : vector<1x1x128xf32> to vector<1xf32>
      %132 = vector.shape_cast %131 : vector<1xf32> to vector<1x1x1xf32>
      %133 = vector.extract %132[0, 0, 0] : f32 from vector<1x1x1xf32>
      %134 = vector.broadcast %133 : f32 to vector<1x1xf32>
      %135 = arith.divf %110, %116 : vector<1x1xf32>
      %cst_64 = arith.constant 1.600000e+01 : f32
      %136 = vector.broadcast %cst_64 : f32 to vector<1x1xf32>
      %137 = arith.divf %122, %136 : vector<1x1xf32>
      %cst_65 = arith.constant 0.000000e+00 : f32
      %138 = vector.broadcast %cst_65 : f32 to vector<1x1xf32>
      %139 = arith.cmpf ogt, %128, %138 : vector<1x1xf32>
      %cst_66 = arith.constant 1.000000e+00 : f32
      %140 = vector.broadcast %cst_66 : f32 to vector<1x1xf32>
      %141 = arith.maximumf %128, %140 : vector<1x1xf32>
      %142 = arith.divf %134, %141 : vector<1x1xf32>
      %cst_67 = arith.constant 2.000000e+01 : f32
      %143 = vector.broadcast %cst_67 : f32 to vector<1x1xf32>
      %144 = arith.mulf %142, %143 : vector<1x1xf32>
      %cst_68 = arith.constant 0.000000e+00 : f32
      %145 = vector.broadcast %cst_68 : f32 to vector<1x1xf32>
      %146 = arith.select %139, %144, %145 : vector<1x1xi1>, vector<1x1xf32>
      %cst_69 = arith.constant 3.000000e-01 : f32
      %147 = vector.broadcast %cst_69 : f32 to vector<1x1xf32>
      %148 = arith.mulf %147, %137 : vector<1x1xf32>
      %149 = arith.addf %135, %148 : vector<1x1xf32>
      %cst_70 = arith.constant 5.000000e-01 : f32
      %150 = vector.broadcast %cst_70 : f32 to vector<1x1xf32>
      %151 = arith.mulf %150, %146 : vector<1x1xf32>
      %152 = arith.addf %149, %151 : vector<1x1xf32>
      %153 = vector.shape_cast %152 : vector<1x1xf32> to vector<1x1xf32>
      %154 = vector.broadcast %153 : vector<1x1xf32> to vector<1x128xf32>
      %c0_71 = arith.constant 0 : index
      %c0_72 = arith.constant 0 : index
      %155 = vector.load %arg3[%c0_71, %c0_72] : memref<1x128xf32, #tpu.memory_space<vmem>>, vector<1x128xf32>
      tpu.vector_store %arg3[%c0_71, %c0_72], %154 {strides = array<i32>} : memref<1x128xf32, #tpu.memory_space<vmem>>, vector<1x128xf32>,
    } else {
    }
    return
  }
  func.func @transform_0(%arg0: i32) -> (i32, i32) {
    %c0_i32 = arith.constant 0 : i32
    %c0_i32_0 = arith.constant 0 : i32
    return %c0_i32, %arg0 : i32, i32
  }
  func.func @transform_1(%arg0: i32) -> (i32, i32) {
    %c0_i32 = arith.constant 0 : i32
    %c0_i32_0 = arith.constant 0 : i32
    return %c0_i32, %arg0 : i32, i32
  }
  func.func @transform_2(%arg0: i32) -> (i32, i32) {
    %c0_i32 = arith.constant 0 : i32
    %c0_i32_0 = arith.constant 0 : i32
    %c0_i32_1 = arith.constant 0 : i32
    return %c0_i32, %c0_i32_0 : i32, i32
  }
}

</mosaic_0001>

<bundles_post_ra>
// kernel: tpu_custom_call.1
= control target key start
LH: loop header
LB: loop body
LE: loop exit
PB: predicated region body
PF: predicated region fallthrough
CT: control target
= control target key end

     0   :  { %7 = vsyncpa [#allocation8], 0  ;;  %s374_s0 = inlined_call_operand.hbm [shape: f32[3,128], index: 0, kind: input, shape index: {}]   ;;  %s375_s1 = inlined_call_operand.vmem [shape: s32[1,128], index: 1, kind: input, shape index: {}]   ;;  %s376_s2 = inlined_call_operand.hbm [shape: f32[1,128], index: 2, kind: output, shape index: {}]  }
   0x1   :  { %8 = vsyncpa [#allocation9], 0  ;;  %s278_s9 = smov [#allocation7]   ;;  %s230_s13 = scalar_lea.hbm %s374_s0, 64 }
   0x2   :  { %s15_s10 = sshll.u32 %s278_s9, 4  ;;  %p231_p0 = scmp.ne.s32.totalorder %s374_s0, %s230_s13  ;;  %s16_s10 = int_to_ptr.vmem [resolvable:$true] %s15_s10 }
   0x3   :  { %p234_p1 = scmp.lt.u32.totalorder %s230_s13, %s374_s0 }
   0x5   :  { %p236_p2 = pnand %p234_p1, %p231_p0 }
   0x7   :  { %239 = shalt.err (!%p236_p2)
}
   0x8   :  { %s240_s18 = scalar_lea.vmem %s16_s10, 64  ;;  %p245_p4 = scmp.lt.s32.totalorder %s16_s10, %s16_s10 }
   0x9   :  { %p241_p3 = scmp.ne.s32.totalorder %s16_s10, %s240_s18  ;;  %p246_p5 = scmp.lt.s32.totalorder %s240_s18, %s240_s18 }
   0xb   :  { %p247_p6 = por %p246_p5, %p245_p4 }
   0xd   :  { %p248_p7 = pnand %p247_p6, %p241_p3 }
   0xf   :  { %251 = shalt.err (!%p248_p7)
}
  0x10   :  { %18 = dma.hbm_to_vmem [thread:$0]  %s374_s0, 64, %s16_s10, [#allocation8]  }
  0x11   :  { %274 = dma.done.wait [#allocation8], 64  }
  0x12   :  { %275 = vsyncadd [#allocation8], 4294967232  ;;  %v81_v0 = vlaneseq  ;;  %v279_v1 = vmov 0.0   ;;  %v309_v3 = vld [vmem:[#allocation7] sm:$0x1]  ;;  %v280_v17 = vmov 2  }
  0x13   :  { %30 = vst [vmem:[#allocation4] sm:$0x1] %v279_v1  ;;  %28 = vst [vmem:[#allocation2] sm:$0x1] %v279_v1  ;;  %v311_v4 = vld [vmem:[#allocation7 + $0x1] sm:$0x1] }
  0x14   :  { %29 = vst [vmem:[#allocation3] sm:$0x1] %v279_v1  ;;  %31 = vst [vmem:[#allocation5] sm:$0x1] %v279_v1  ;;  %v82_v2 = vand.u32 127, %v81_v0  ;;  %vm111_vm10 = vcmask 1040384  }
  0x15   :  { %32 = vst [vmem:[#allocation6] sm:$0x1] %v279_v1  ;;  %v313_v5 = vld [vmem:[#allocation7 + $0x2] sm:$0x1]  ;;  %v318_v6 = vld [vmem:[%s375_s1] sm:$0x1] }
  0x16   :  { %vm85_vm0 = vcmp.lt.s32.totalorder %v82_v2, 16  ;;  %v37_v7 = vmax.f32 %v311_v4, %v313_v5  ;;  %vm73_vm1 = vcmp.eq.s32.totalorder %v318_v6, 2  ;;  %vm53_vm4 = vcmp.eq.s32.totalorder %v318_v6, 0  ;;  %s281_s26 = smov [#allocation10]  }
  0x17   :  { %v326_v9 = vsel %vm85_vm0, 1.0, %v279_v1  ;;  %v201_v10 = vsel %vm73_vm1, 1.0, %v279_v1  ;;  %vm54_vm5 = vcmp.eq.s32.totalorder %v318_v6, 1  ;;  %s192_s27 = sshll.u32 %s281_s26, 4  ;;  %s193_s27 = int_to_ptr.vmem [resolvable:$true] %s192_s27 }
  0x18   :  { %v324_v8 = vmax.f32 %v309_v3, %v37_v7  ;;  %v100_v13 = vmul.f32 %v326_v9, %v201_v10  ;;  %v55_v50 = vsel %vm54_vm5, %v311_v4, %v313_v5  ;;  %s252_s28 = scalar_lea.vmem %s193_s27, 16  ;;  %s256_s29 = scalar_lea.vmem %s193_s27, 32 }
  0x19   :  { %v56_v53 = vsel %vm53_vm4, %v309_v3, %v55_v50  ;;  %p253_p8 = scmp.ne.s32.totalorder %s193_s27, %s252_s28  ;;  %p257_p9 = scmp.lt.s32.totalorder %s193_s27, %s193_s27 }
  0x1a   :  { %v39_v15 = vsub.f32 %v309_v3, %v324_v8  ;;  %v42_v16 = vsub.f32 %v311_v4, %v324_v8  ;;  %vm58_vm2 = vcmp.ge.f32.partialorder %v309_v3, %v324_v8  ;;  %vm59_vm3 = vcmp.ge.f32.partialorder %v311_v4, %v324_v8  ;;  %v95_v33 = vld [vmem:[#allocation4] sm:$0x1]  ;;  %v88_v56 = vld [vmem:[#allocation2] sm:$0x1]  ;;  %p258_p10 = scmp.lt.s32.totalorder %s256_s29, %s252_s28 }
  0x1b   :  { %v99_v11 = vld [vmem:[#allocation5] sm:$0x1]  ;;  %v92_v12 = vld [vmem:[#allocation3] sm:$0x1]  ;;  %v60_v18 = vsel %vm59_vm3, 1, %v280_v17  ;;  %v46_v20 = vsub.f32 %v313_v5, %v324_v8 }
  0x1c   :  { %v93_v14 = vadd.f32 %v326_v9, %v92_v12  ;;  %v101_v19 = vadd.f32 %v100_v13, %v99_v11  ;;  %v40_v21 = vmul.f32 1.442695, %v39_v15  ;;  %v43_v22 = vmul.f32 1.442695, %v42_v16  ;;  %v103_v37 = vld [vmem:[#allocation6] sm:$0x1]  ;;  %p259_p11 = por %p258_p10, %p257_p9 }
  0x1d   :  { %v61_v23 = vsel %vm58_vm2, 0, %v60_v18  ;;  %v47_v24 = vmul.f32 1.442695, %v46_v20 }
  0x1e   :  { %94 = vst [vmem:[#allocation3] sm:$0x1] %v93_v14  ;;  %vm62_vm6 = vcmp.eq.s32.totalorder %v61_v23, 1  ;;  %vm63_vm7 = vcmp.eq.s32.totalorder %v61_v23, 2  ;;  %vm66_vm8 = vcmp.eq.s32.totalorder %v61_v23, 0  ;;  %218 = vpow2.f32 %v40_v21  ;;  %p260_p12 = pnand %p259_p11, %p253_p8 }
  0x1f   :  { %102 = vst [vmem:[#allocation5] sm:$0x1] %v101_v19  ;;  %v64_v25 = vsel %vm63_vm7, 2.0, %v279_v1  ;;  %v67_v26 = vsel %vm63_vm7, 1.0, %v279_v1  ;;  %v69_v27 = vsel %vm62_vm6, 10.0, %v279_v1  ;;  %220 = vpow2.f32 %v43_v22 }
  0x20   :  { %v65_v28 = vsel %vm62_vm6, 1.0, %v64_v25  ;;  %v68_v29 = vsel %vm66_vm8, 5.0, %v67_v26  ;;  %v70_v30 = vsel %vm66_vm8, 20.0, %v69_v27  ;;  %222 = vpow2.f32 %v47_v24 }
  0x21   :  { %v71_v31 = vsel %vm54_vm5, %v68_v29, %v70_v30  ;;  %vm76_vm9 = vcmp.ne.s32.totalorder %v61_v23, 2 }
  0x22   :  { %v72_v32 = vsel %vm53_vm4, %v65_v28, %v71_v31  ;;  %v202_v34 = vsel %vm76_vm9, 1.0, %v279_v1 }
  0x23   :  { %v96_v35 = vmul.f32 %v326_v9, %v72_v32  ;;  %v79_v36 = vmul.f32 %v202_v34, %v201_v10 }
  0x25   :  { %v97_v38 = vadd.f32 %v96_v35, %v95_v33  ;;  %v104_v39 = vmul.f32 %v326_v9, %v79_v36  ;;  %v123_v60 = vld [vmem:[#allocation3] sm:$0x1] }
  0x26   :  { %v147_v47 = vld [vmem:[#allocation5] sm:$0x1]  ;;  %v124_v62 = vsel %vm111_vm10, %v123_v60, 0.0 }
  0x27   :  { %98 = vst [vmem:[#allocation4] sm:$0x1] %v97_v38  ;;  %v105_v40 = vadd.f32 %v104_v39, %v103_v37  ;;  %v148_v49 = vsel %vm111_vm10, %v147_v47, 0.0 }
  0x28   :  { %v219_v41 = vpop.eup %218 }
  0x29   :  { %106 = vst [vmem:[#allocation6] sm:$0x1] %v105_v40  ;;  %v221_v42 = vpop.eup %220 }
  0x2a   :  { %v223_v43 = vpop.eup %222  ;;  %v45_v44 = vadd.f32 %v221_v42, %v219_v41 }
  0x2c   :  { %v49_v45 = vadd.f32 %v223_v43, %v45_v44 }
  0x2e   :  { %v135_v46 = vld [vmem:[#allocation4] sm:$0x1]  ;;  %224 = vlog2.f32 %v49_v45 }
  0x2f   :  { %v136_v48 = vsel %vm111_vm10, %v135_v46, 0.0 }
  0x30   :  { %137 = vadd.xlane.f32.xlu1 %v136_v48  ;;  %v159_v63 = vld [vmem:[#allocation6] sm:$0x1] }
  0x31   :  { %v160_v0 = vsel %vm111_vm10, %v159_v63, 0.0 }
  0x34   :  { %149 = vadd.xlane.f32.xlu1 %v148_v49 }
  0x38   :  { %v225_v51 = vpop.eup %224 }
  0x39   :  { %v51_v52 = vmul.f32 0.6931472, %v225_v51 }
  0x3b   :  { %v52_v54 = vadd.f32 %v51_v52, %v324_v8 }
  0x3d   :  { %v57_v55 = vsub.f32 %v52_v54, %v56_v53 }
  0x3f   :  { %v89_v57 = vmul.f32 %v326_v9, %v57_v55 }
  0x41   :  { %v90_v58 = vadd.f32 %v89_v57, %v88_v56 }
  0x43   :  { %91 = vst [vmem:[#allocation2] sm:$0x1] %v90_v58 }
  0x4a   :  { %v110_v59 = vld [vmem:[#allocation2] sm:$0x1] }
  0x4b   :  { %v112_v61 = vsel %vm111_vm10, %v110_v59, 0.0 }
  0x4c   :  { %113 = vadd.xlane.f32.xlu0 %v112_v61 }
  0x50   :  { %125 = vadd.xlane.f32.xlu0 %v124_v62 }
  0x54   :  { %161 = vadd.xlane.f32.xlu0 %v160_v0 }
  0xbd   :  { %v138_v1 = vpop.xlane.xlu1 %137 }
  0xbe   :  { %v139_v3 = vrot.slane %v138_v1, 4 }
  0xc0   :  { %v140_v5 = vadd.f32 %v139_v3, %v138_v1 }
  0xc1   :  { %v150_v2 = vpop.xlane.xlu1 %149 }
  0xc2   :  { %v151_v4 = vrot.slane %v150_v2, 4  ;;  %v141_v10 = vrot.slane %v140_v5, 2 }
  0xc4   :  { %v152_v7 = vadd.f32 %v151_v4, %v150_v2  ;;  %v142_v18 = vadd.f32 %v141_v10, %v140_v5 }
  0xc6   :  { %v153_v12 = vrot.slane %v152_v7, 2  ;;  %v143_v26 = vrot.slane %v142_v18, 1 }
  0xc8   :  { %v154_v19 = vadd.f32 %v153_v12, %v152_v7  ;;  %v144_v32 = vadd.f32 %v143_v26, %v142_v18 }
  0xca   :  { %v155_v29 = vrot.slane %v154_v19, 1 }
  0xcc   :  { %v156_v33 = vadd.f32 %v155_v29, %v154_v19 }
  0xd9   :  { %v114_v6 = vpop.xlane.xlu0 %113 }
  0xda   :  { %v115_v8 = vrot.slane %v114_v6, 4 }
  0xdc   :  { %v116_v9 = vadd.f32 %v115_v8, %v114_v6 }
  0xdd   :  { %v126_v11 = vpop.xlane.xlu0 %125 }
  0xde   :  { %v117_v13 = vrot.slane %v116_v9, 2  ;;  %v127_v14 = vrot.slane %v126_v11, 4 }
  0xe0   :  { %v128_v15 = vadd.f32 %v127_v14, %v126_v11  ;;  %v118_v16 = vadd.f32 %v117_v13, %v116_v9 }
  0xe1   :  { %v162_v17 = vpop.xlane.xlu0 %161 }
  0xe2   :  { %v129_v20 = vrot.slane %v128_v15, 2  ;;  %v163_v21 = vrot.slane %v162_v17, 4  ;;  %v119_v22 = vrot.slane %v118_v16, 1 }
  0xe4   :  { %v164_v23 = vadd.f32 %v163_v21, %v162_v17  ;;  %v120_v24 = vadd.f32 %v119_v22, %v118_v16  ;;  %v130_v25 = vadd.f32 %v129_v20, %v128_v15 }
  0xe6   :  { %v165_v27 = vrot.slane %v164_v23, 2  ;;  %204 = vpush %v120_v24  ;;  %v131_v28 = vrot.slane %v130_v25, 1 }
  0xe8   :  { %v166_v30 = vadd.f32 %v165_v27, %v164_v23  ;;  %v132_v31 = vadd.f32 %v131_v28, %v130_v25 }
  0xea   :  { %206 = vpush %v132_v31  ;;  %v167_v34 = vrot.slane %v166_v30, 1 }
  0xeb   :  { %208 = vpush %v144_v32 }
  0xec   :  { %210 = vpush %v156_v33  ;;  %v168_v35 = vadd.f32 %v167_v34, %v166_v30 }
  0xee   :  { %212 = vpush %v168_v35 }
 0x117   :  { %s205_s0 = spop %204 }
 0x118   :  { %v122_v44 = vstv %s205_s0 }
 0x11b   :  { %s207_s1 = spop %206 }
 0x11c   :  { %s209_s23 = spop %208  ;;  %v134_v36 = vstv %s207_s1 }
 0x11d   :  { %s211_s24 = spop %210  ;;  %226 = vrcp.f32 %v134_v36  ;;  %v146_v39 = vstv %s209_s23 }
 0x11e   :  { %v158_v37 = vstv %s211_s24  ;;  %v174_v42 = vmul.f32 0.0625, %v146_v39 }
 0x11f   :  { %v176_v38 = vmax.f32 %v158_v37, 1.0  ;;  %s213_s25 = spop %212  ;;  %vm175_vm11 = vcmp.gt.f32.partialorder %v158_v37, 0.0 }
 0x120   :  { %v170_v43 = vstv %s213_s25  ;;  %v181_v48 = vmul.f32 0.3, %v174_v42 }
 0x121   :  { %228 = vrcp.f32 %v176_v38 }
 0x127   :  { %v227_v40 = vpop.eup %226 }
 0x128   :  { %v172_v46 = vmul.f32 %v227_v40, %v122_v44 }
 0x12a   :  { %v182_v50 = vadd.f32 %v181_v48, %v172_v46 }
 0x12b   :  { %v229_v41 = vpop.eup %228 }
 0x12c   :  { %v178_v45 = vmul.f32 %v229_v41, %v170_v43 }
 0x12e   :  { %v179_v47 = vmul.f32 20.0, %v178_v45 }
 0x130   :  { %v180_v49 = vsel %vm175_vm11, %v179_v47, 0.0 }
 0x131   :  { %v183_v51 = vmul.f32 0.5, %v180_v49 }
 0x133   :  { %v184_v52 = vadd.f32 %v183_v51, %v182_v50 }
 0x135   :  { %185 = vst [vmem:[#allocation10] sm:$0x1] %v184_v52 }
 0x136   :  { %263 = shalt.err (!%p260_p12)
}
 0x137   :  { %s264_s4 = scalar_lea.hbm %s376_s2, 16 }
 0x138   :  { %p265_p13 = scmp.ne.s32.totalorder %s376_s2, %s264_s4  ;;  %p268_p0 = scmp.lt.u32.totalorder %s264_s4, %s376_s2 }
 0x13a   :  { %p270_p1 = pnand %p268_p0, %p265_p13 }
 0x13c   :  { %273 = shalt.err (!%p270_p1)
}
 0x13d   :  { %195 = dma.vmem_to_hbm [thread:$0]  %s193_s27, 16, %s376_s2, [#allocation9]  }
 0x13e   :  { %276 = dma.done.wait [#allocation9], 16  }
 0x13f   :  { %277 = vsyncadd [#allocation9], 4294967280 }
 0x140   :  { %199 = vsyncpa [#allocation8], 1 }
 0x141   :  { %200 = vsyncpa [#allocation9], 1 }

</bundles_post_ra>
